<compile_context>
chip_gen: v7x
topology: tpu7x:2x2x1
jax: 0.10.0
libtpu: 0.0.40
codegen_flags: <defaults>
</compile_context>

<pallas_src>
import functools

import jax
import jax.numpy as jnp
from jax.experimental import pallas as pl
from jax.experimental.pallas import tpu as pltpu

_BN_EPS = 1e-5
_ALIGN = 256  # pad feature dims to 256 (full 256-wide MXU tiles on v6e/v7x)


def _round_up(n, m):
    return ((n + m - 1) // m) * m


def _vmem_capacity_bytes():
    try:
        return int(pltpu.get_tpu_info().vmem_capacity_bytes)
    except Exception:
        return 64 << 20  # conservative: v7x per-TensorCore VMEM


def _layer_vmem_bytes(B, Kp, Np, tn, x_bytes, out_bytes, nbuf_w):
    return (
        B * Kp * x_bytes           # activation block: constant index_map -> 1 buffer
        + nbuf_w * Kp * tn * 2     # bf16 weight tiles, multi-buffered
        + 2 * B * tn * out_bytes   # output tiles, double-buffered
        + 2 * 2 * Np * 4           # packed gamma/beta (resident, small)
        + (4 << 20)                # compiler scratch headroom
    )


# ----------------------------------------------------------------------------
# Kernel: one (Linear -> BN -> optional ReLU) layer, one output-feature tile.
# ----------------------------------------------------------------------------
def _linear_bn_kernel(x_ref, w_ref, gb_ref, o_ref, *, tn, inv_b, apply_relu):
    # x: [B, Kp] bf16, w: [Kp, tn] bf16, gb: [2, Np] f32, o: [B, tn] bf16/f32
    y = jnp.dot(x_ref[...], w_ref[...], preferred_element_type=jnp.float32)

    # Slice the resident gamma/beta vectors for this tile (no per-step DMA).
    off = pl.multiple_of(pl.program_id(0) * tn, tn)
    gb = gb_ref[:, pl.ds(off, tn)]
    gamma = gb[0:1, :]
    beta = gb[1:2, :]

    # Fused training-mode BatchNorm1d (biased batch variance), single pass.
    mean = jnp.sum(y, axis=0, keepdims=True) * inv_b          # [1, tn]
    msq = jnp.sum(y * y, axis=0, keepdims=True) * inv_b       # [1, tn]
    var = jnp.maximum(msq - mean * mean, 0.0)                 # clamp cancellation
    scale = gamma * jax.lax.rsqrt(var + _BN_EPS)
    shift = beta - mean * scale
    y = y * scale + shift
    if apply_relu:
        y = jnp.maximum(y, 0.0)
    o_ref[...] = y.astype(o_ref.dtype)


def _linear_bn_layer(x, w, gb, *, apply_relu, out_dtype):
    """x:[B,Kp] bf16, w:[Kp,Np] bf16, gb:[2,Np] f32 -> [B,Np] out_dtype."""
    B, Kp = x.shape
    Kp2, Np = w.shape
    assert Kp == Kp2
    assert Kp % 128 == 0 and Np % 128 == 0, "feature dims must be lane-padded"

    cap = _vmem_capacity_bytes()
    x_bytes = jnp.dtype(x.dtype).itemsize
    out_bytes = jnp.dtype(out_dtype).itemsize

    # Largest 256-aligned output tile that fits the (capacity - headroom) budget.
    tn = 128
    for cand in (512, 256):
        if Np % cand == 0 and _layer_vmem_bytes(
                B, Kp, Np, cand, x_bytes, out_bytes, 3) <= cap - (8 << 20):
            tn = cand
            break
    num_tiles = Np // tn

    nbuf_w = 3 if num_tiles >= 3 else 2
    vmem_bytes = _layer_vmem_bytes(B, Kp, Np, tn, x_bytes, out_bytes, nbuf_w)
    vmem_limit = int(min(cap - (8 << 20), max(vmem_bytes, 16 << 20)))

    w_idx = lambda j: (0, j)
    if num_tiles >= 3:
        # 3-deep weight buffering hides the first-steps x-fetch contention.
        try:
            w_spec = pl.BlockSpec((Kp, tn), w_idx, pipeline_mode=pl.Buffered(3))
        except TypeError:
            w_spec = pl.BlockSpec((Kp, tn), w_idx)
    else:
        w_spec = pl.BlockSpec((Kp, tn), w_idx)

    kernel = functools.partial(
        _linear_bn_kernel, tn=tn, inv_b=float(1.0 / B), apply_relu=apply_relu
    )

    return pl.pallas_call(
        kernel,
        out_shape=jax.ShapeDtypeStruct((B, Np), out_dtype),
        grid=(num_tiles,),
        in_specs=[
            pl.BlockSpec((B, Kp), lambda j: (0, 0)),   # activations (resident)
            w_spec,                                    # weight tile (streamed)
            pl.BlockSpec((2, Np), lambda j: (0, 0)),   # packed gamma/beta (resident)
        ],
        out_specs=pl.BlockSpec((B, tn), lambda j: (0, j)),
        compiler_params=pltpu.CompilerParams(
            dimension_semantics=("parallel",),
            vmem_limit_bytes=vmem_limit,
        ),
    )(x, w, gb)


# ----------------------------------------------------------------------------
# Parameter preparation: pad to 256 multiples, cast weights to bf16,
# pack gamma/beta into [2, Np] f32.
# ----------------------------------------------------------------------------
def prepare_params(params):
    in_dim, hidden_dim = params["w1"].shape
    out_dim = params["w3"].shape[1]
    # Reference module builds bn3 = BatchNorm1d(hidden_dim): only shape-correct
    # when hidden_dim == out_dim.
    assert hidden_dim == out_dim, "projection_MLP requires hidden_dim == out_dim (bn3)"

    in_p = _round_up(in_dim, _ALIGN)
    hid_p = _round_up(hidden_dim, _ALIGN)
    out_p = _round_up(out_dim, _ALIGN)

    def pad_w(w, rows, cols):
        r, c = w.shape
        return jnp.pad(w, ((0, rows - r), (0, cols - c))).astype(jnp.bfloat16)

    def pack_gb(g, b, cols):
        g_p = jnp.pad(g, ((0, 0), (0, cols - g.shape[1])), constant_values=1.0)
        b_p = jnp.pad(b, ((0, 0), (0, cols - b.shape[1])), constant_values=0.0)
        return jnp.concatenate([g_p, b_p], axis=0).astype(jnp.float32)

    # NOTE: Linear biases intentionally omitted: exactly cancelled by the
    # training-mode BN mean subtraction.
    return dict(
        w1=pad_w(params["w1"], in_p, hid_p),
        w2=pad_w(params["w2"], hid_p, hid_p),
        w3=pad_w(params["w3"], hid_p, out_p),
        gb1=pack_gb(params["g1"], params["be1"], hid_p),
        gb2=pack_gb(params["g2"], params["be2"], hid_p),
        gb3=pack_gb(params["g3"], params["be3"], out_p),
    )


@functools.partial(jax.jit, static_argnames=("out_dim",))
def projection_mlp_forward(x, prepared, *, out_dim):
    B, in_dim = x.shape
    in_p = prepared["w1"].shape[0]
    # bf16 activations end-to-end (halves activation HBM traffic & VMEM
    # footprint); BN math and matmul accumulation remain f32 in-kernel.
    x_p = jnp.pad(x, ((0, 0), (0, in_p - in_dim))).astype(jnp.bfloat16)

    h = _linear_bn_layer(x_p, prepared["w1"], prepared["gb1"],
                         apply_relu=True, out_dtype=jnp.bfloat16)
    h = _linear_bn_layer(h, prepared["w2"], prepared["gb2"],
                         apply_relu=True, out_dtype=jnp.bfloat16)
    h = _linear_bn_layer(h, prepared["w3"], prepared["gb3"],
                         apply_relu=False, out_dtype=jnp.float32)
    return h[:, :out_dim]


# ----------------------------------------------------------------------------
# Init + pure-JAX references
# ----------------------------------------------------------------------------
def init_params(key, in_dim, hidden_dim, out_dim):
    """Deterministic synthetic init (PyTorch-Linear-style uniform bounds)."""
    ks = jax.random.split(key, 12)

    def lin(kw, kb, fan_in, fan_out):
        bound = 1.0 / jnp.sqrt(fan_in)
        w = jax.random.uniform(kw, (fan_in, fan_out), jnp.float32, -bound, bound)
        b = jax.random.uniform(kb, (1, fan_out), jnp.float32, -bound, bound)
        return w, b

    w1, b1 = lin(ks[0], ks[1], in_dim, hidden_dim)
    w2, b2 = lin(ks[2], ks[3], hidden_dim, hidden_dim)
    w3, b3 = lin(ks[4], ks[5], hidden_dim, out_dim)

    def bn(kg, kb, dim):
        g = 1.0 + 0.1 * jax.random.normal(kg, (1, dim), jnp.float32)
        b = 0.1 * jax.random.normal(kb, (1, dim), jnp.float32)
        return g, b

    g1, be1 = bn(ks[6], ks[7], hidden_dim)
    g2, be2 = bn(ks[8], ks[9], hidden_dim)
    g3, be3 = bn(ks[10], ks[11], out_dim)

    return dict(w1=w1, b1=b1, g1=g1, be1=be1,
                w2=w2, b2=b2, g2=g2, be2=be2,
                w3=w3, b3=b3, g3=g3, be3=be3)


def _bn_train_ref(y, gamma, beta):
    mean = jnp.mean(y, axis=0, keepdims=True)
    var = jnp.mean((y - mean) * (y - mean), axis=0, keepdims=True)
    return gamma * (y - mean) * jax.lax.rsqrt(var + _BN_EPS) + beta


def reference_forward_f32(x, p):
    """PyTorch-faithful forward (f32, with Linear biases, training-mode BN)."""
    h = x @ p["w1"] + p["b1"]
    h = jnp.maximum(_bn_train_ref(h, p["g1"], p["be1"]), 0.0)
    h = h @ p["w2"] + p["b2"]
    h = jnp.maximum(_bn_train_ref(h, p["g2"], p["be2"]), 0.0)
    h = h @ p["w3"] + p["b3"]
    return _bn_train_ref(h, p["g3"], p["be3"])


def reference_forward_bf16(x, p):
    """Same numerics path as the kernel (bf16 activations/weights, f32 acc,
    fused single-pass BN, bf16 inter-layer storage)."""
    def layer(h, w, g, b, relu, out_bf16):
        y = jnp.dot(h.astype(jnp.bfloat16), w.astype(jnp.bfloat16),
                    preferred_element_type=jnp.float32)
        mean = jnp.mean(y, axis=0, keepdims=True)
        var = jnp.maximum(jnp.mean(y * y, axis=0, keepdims=True) - mean * mean, 0.0)
        scale = g * jax.lax.rsqrt(var + _BN_EPS)
        y = y * scale + (b - mean * scale)
        if relu:
            y = jnp.maximum(y, 0.0)
        return y.astype(jnp.bfloat16) if out_bf16 else y

    h = layer(x, p["w1"], p["g1"], p["be1"], True, True)
    h = layer(h, p["w2"], p["g2"], p["be2"], True, True)
    return layer(h, p["w3"], p["g3"], p["be3"], False, False)


if __name__ == "__main__":
    B, IN_DIM, HIDDEN, OUT = 8, 16, 32, 32  # OUT must equal HIDDEN (bn3)

    key = jax.random.PRNGKey(0)
    kx, kp = jax.random.split(key)
    x = jax.random.normal(kx, (B, IN_DIM), jnp.float32)
    params = init_params(kp, IN_DIM, HIDDEN, OUT)
    prepared = prepare_params(params)

    out = projection_mlp_forward(x, prepared, out_dim=OUT)
    out = jax.block_until_ready(out)

    ref_match = reference_forward_bf16(x, params)   # same bf16/f32 numerics
    ref_f32 = reference_forward_f32(x, params)      # PyTorch-faithful f32

    assert out.shape == (B, OUT)
    assert bool(jnp.all(jnp.isfinite(out)))
    assert float(jnp.max(jnp.abs(out - ref_match))) < 5e-3, \
        "mismatch vs numerics-matched reference"
    assert float(jnp.max(jnp.abs(out - ref_f32))) < 1.5e-1, \
        "mismatch vs PyTorch-faithful f32 reference (beyond bf16 tolerance)"

    print("KERNEL_OK")
</pallas_src>

<mosaic_0001>
module attributes {stable_mosaic.version = 11 : i64} {
  func.func @_linear_bn_kernel(%arg0: i32, %arg1: memref<8x256xbf16, #tpu.memory_space<vmem>>, %arg2: memref<256x256xbf16, #tpu.memory_space<vmem>>, %arg3: memref<2x256xf32, #tpu.memory_space<vmem>>, %arg4: memref<8x256xbf16, #tpu.memory_space<vmem>>) attributes {dimension_semantics = [#tpu.dimension_semantics<parallel>], iteration_bounds = array<i64: 1>, scalar_prefetch = 0 : i64, scratch_operands = 0 : i64, tpu.core_type = #tpu.core_type<tc>, window_params = [{pipeline_mode = #tpu.pipeline_mode<synchronous>, transform_indices = @transform_0, window_bounds = array<i64: 8, 256>}, {transform_indices = @transform_1, window_bounds = array<i64: 256, 256>}, {pipeline_mode = #tpu.pipeline_mode<synchronous>, transform_indices = @transform_2, window_bounds = array<i64: 2, 256>}, {transform_indices = @transform_3, window_bounds = array<i64: 8, 256>}]} {
    %c0 = arith.constant 0 : index
    %c0_0 = arith.constant 0 : index
    %0 = vector.load %arg1[%c0, %c0_0] : memref<8x256xbf16, #tpu.memory_space<vmem>>, vector<8x256xbf16>
    %c0_1 = arith.constant 0 : index
    %c0_2 = arith.constant 0 : index
    %1 = vector.load %arg2[%c0_1, %c0_2] : memref<256x256xbf16, #tpu.memory_space<vmem>>, vector<256x256xbf16>
    %cst = arith.constant dense<0.000000e+00> : vector<8x256xf32>
    %2 = tpu.matmul %0, %1, %cst {dimension_numbers = #tpu.dot_dimension_numbers<[1], [0], [0], [1], [0, 0, 1, 1], [], []>} : vector<8x256xbf16>, vector<256x256xbf16>, vector<8x256xf32> -> vector<8x256xf32>
    %c256_i32 = arith.constant 256 : i32
    %3 = arith.muli %arg0, %c256_i32 : i32
    %4 = tpu.assume_multiple %3, 256 : i32
    %c0_3 = arith.constant 0 : index
    %5 = arith.index_cast %4 : i32 to index
    %6 = vector.load %arg3[%c0_3, %5] : memref<2x256xf32, #tpu.memory_space<vmem>>, vector<2x256xf32>
    %7 = vector.extract_strided_slice %6 {offsets = [0, 0], sizes = [1, 256], strides = [1, 1]} : vector<2x256xf32> to vector<1x256xf32>
    %8 = vector.extract_strided_slice %6 {offsets = [1, 0], sizes = [1, 256], strides = [1, 1]} : vector<2x256xf32> to vector<1x256xf32>
    %cst_4 = arith.constant dense<0.000000e+00> : vector<256xf32>
    %9 = vector.multi_reduction <add>, %2, %cst_4 [0] : vector<8x256xf32> to vector<256xf32>
    %10 = vector.shape_cast %9 : vector<256xf32> to vector<1x256xf32>
    %cst_5 = arith.constant 1.250000e-01 : f32
    %11 = vector.broadcast %cst_5 : f32 to vector<1x256xf32>
    %12 = arith.mulf %10, %11 : vector<1x256xf32>
    %13 = arith.mulf %2, %2 : vector<8x256xf32>
    %cst_6 = arith.constant dense<0.000000e+00> : vector<256xf32>
    %14 = vector.multi_reduction <add>, %13, %cst_6 [0] : vector<8x256xf32> to vector<256xf32>
    %15 = vector.shape_cast %14 : vector<256xf32> to vector<1x256xf32>
    %cst_7 = arith.constant 1.250000e-01 : f32
    %16 = vector.broadcast %cst_7 : f32 to vector<1x256xf32>
    %17 = arith.mulf %15, %16 : vector<1x256xf32>
    %18 = arith.mulf %12, %12 : vector<1x256xf32>
    %19 = arith.subf %17, %18 : vector<1x256xf32>
    %cst_8 = arith.constant 0.000000e+00 : f32
    %20 = vector.broadcast %cst_8 : f32 to vector<1x256xf32>
    %21 = arith.maximumf %19, %20 : vector<1x256xf32>
    %cst_9 = arith.constant 9.99999974E-6 : f32
    %22 = vector.broadcast %cst_9 : f32 to vector<1x256xf32>
    %23 = arith.addf %21, %22 : vector<1x256xf32>
    %24 = math.rsqrt %23 : vector<1x256xf32>
    %25 = arith.mulf %7, %24 : vector<1x256xf32>
    %26 = arith.mulf %12, %25 : vector<1x256xf32>
    %27 = arith.subf %8, %26 : vector<1x256xf32>
    %28 = vector.broadcast %25 : vector<1x256xf32> to vector<8x256xf32>
    %29 = arith.mulf %2, %28 : vector<8x256xf32>
    %30 = vector.broadcast %27 : vector<1x256xf32> to vector<8x256xf32>
    %31 = arith.addf %29, %30 : vector<8x256xf32>
    %cst_10 = arith.constant 0.000000e+00 : f32
    %32 = vector.broadcast %cst_10 : f32 to vector<8x256xf32>
    %33 = arith.maximumf %31, %32 : vector<8x256xf32>
    %34 = arith.truncf %33 : vector<8x256xf32> to vector<8x256xbf16>
    %c0_11 = arith.constant 0 : index
    %c0_12 = arith.constant 0 : index
    %35 = vector.load %arg4[%c0_11, %c0_12] : memref<8x256xbf16, #tpu.memory_space<vmem>>, vector<8x256xbf16>
    tpu.vector_store %arg4[%c0_11, %c0_12], %34 {strides = array<i32>} : memref<8x256xbf16, #tpu.memory_space<vmem>>, vector<8x256xbf16>,
    return
  }
  func.func @transform_0(%arg0: i32) -> (i32, i32) {
    %c0_i32 = arith.constant 0 : i32
    %c0_i32_0 = arith.constant 0 : i32
    %c0_i32_1 = arith.constant 0 : i32
    return %c0_i32, %c0_i32_0 : i32, i32
  }
  func.func @transform_1(%arg0: i32) -> (i32, i32) {
    %c0_i32 = arith.constant 0 : i32
    %c0_i32_0 = arith.constant 0 : i32
    return %c0_i32, %arg0 : i32, i32
  }
  func.func @transform_2(%arg0: i32) -> (i32, i32) {
    %c0_i32 = arith.constant 0 : i32
    %c0_i32_0 = arith.constant 0 : i32
    %c0_i32_1 = arith.constant 0 : i32
    return %c0_i32, %c0_i32_0 : i32, i32
  }
  func.func @transform_3(%arg0: i32) -> (i32, i32) {
    %c0_i32 = arith.constant 0 : i32
    %c0_i32_0 = arith.constant 0 : i32
    return %c0_i32, %arg0 : i32, i32
  }
}

module attributes {stable_mosaic.version = 11 : i64} {
  func.func @_linear_bn_kernel(%arg0: i32, %arg1: memref<8x256xbf16, #tpu.memory_space<vmem>>, %arg2: memref<256x256xbf16, #tpu.memory_space<vmem>>, %arg3: memref<2x256xf32, #tpu.memory_space<vmem>>, %arg4: memref<8x256xbf16, #tpu.memory_space<vmem>>) attributes {dimension_semantics = [#tpu.dimension_semantics<parallel>], iteration_bounds = array<i64: 1>, scalar_prefetch = 0 : i64, scratch_operands = 0 : i64, tpu.core_type = #tpu.core_type<tc>, window_params = [{pipeline_mode = #tpu.pipeline_mode<synchronous>, transform_indices = @transform_0, window_bounds = array<i64: 8, 256>}, {transform_indices = @transform_1, window_bounds = array<i64: 256, 256>}, {pipeline_mode = #tpu.pipeline_mode<synchronous>, transform_indices = @transform_2, window_bounds = array<i64: 2, 256>}, {transform_indices = @transform_3, window_bounds = array<i64: 8, 256>}]} {
    %c0 = arith.constant 0 : index
    %c0_0 = arith.constant 0 : index
    %0 = vector.load %arg1[%c0, %c0_0] : memref<8x256xbf16, #tpu.memory_space<vmem>>, vector<8x256xbf16>
    %c0_1 = arith.constant 0 : index
    %c0_2 = arith.constant 0 : index
    %1 = vector.load %arg2[%c0_1, %c0_2] : memref<256x256xbf16, #tpu.memory_space<vmem>>, vector<256x256xbf16>
    %cst = arith.constant dense<0.000000e+00> : vector<8x256xf32>
    %2 = tpu.matmul %0, %1, %cst {dimension_numbers = #tpu.dot_dimension_numbers<[1], [0], [0], [1], [0, 0, 1, 1], [], []>} : vector<8x256xbf16>, vector<256x256xbf16>, vector<8x256xf32> -> vector<8x256xf32>
    %c256_i32 = arith.constant 256 : i32
    %3 = arith.muli %arg0, %c256_i32 : i32
    %4 = tpu.assume_multiple %3, 256 : i32
    %c0_3 = arith.constant 0 : index
    %5 = arith.index_cast %4 : i32 to index
    %6 = vector.load %arg3[%c0_3, %5] : memref<2x256xf32, #tpu.memory_space<vmem>>, vector<2x256xf32>
    %7 = vector.extract_strided_slice %6 {offsets = [0, 0], sizes = [1, 256], strides = [1, 1]} : vector<2x256xf32> to vector<1x256xf32>
    %8 = vector.extract_strided_slice %6 {offsets = [1, 0], sizes = [1, 256], strides = [1, 1]} : vector<2x256xf32> to vector<1x256xf32>
    %cst_4 = arith.constant dense<0.000000e+00> : vector<256xf32>
    %9 = vector.multi_reduction <add>, %2, %cst_4 [0] : vector<8x256xf32> to vector<256xf32>
    %10 = vector.shape_cast %9 : vector<256xf32> to vector<1x256xf32>
    %cst_5 = arith.constant 1.250000e-01 : f32
    %11 = vector.broadcast %cst_5 : f32 to vector<1x256xf32>
    %12 = arith.mulf %10, %11 : vector<1x256xf32>
    %13 = arith.mulf %2, %2 : vector<8x256xf32>
    %cst_6 = arith.constant dense<0.000000e+00> : vector<256xf32>
    %14 = vector.multi_reduction <add>, %13, %cst_6 [0] : vector<8x256xf32> to vector<256xf32>
    %15 = vector.shape_cast %14 : vector<256xf32> to vector<1x256xf32>
    %cst_7 = arith.constant 1.250000e-01 : f32
    %16 = vector.broadcast %cst_7 : f32 to vector<1x256xf32>
    %17 = arith.mulf %15, %16 : vector<1x256xf32>
    %18 = arith.mulf %12, %12 : vector<1x256xf32>
    %19 = arith.subf %17, %18 : vector<1x256xf32>
    %cst_8 = arith.constant 0.000000e+00 : f32
    %20 = vector.broadcast %cst_8 : f32 to vector<1x256xf32>
    %21 = arith.maximumf %19, %20 : vector<1x256xf32>
    %cst_9 = arith.constant 9.99999974E-6 : f32
    %22 = vector.broadcast %cst_9 : f32 to vector<1x256xf32>
    %23 = arith.addf %21, %22 : vector<1x256xf32>
    %24 = math.rsqrt %23 : vector<1x256xf32>
    %25 = arith.mulf %7, %24 : vector<1x256xf32>
    %26 = arith.mulf %12, %25 : vector<1x256xf32>
    %27 = arith.subf %8, %26 : vector<1x256xf32>
    %28 = vector.broadcast %25 : vector<1x256xf32> to vector<8x256xf32>
    %29 = arith.mulf %2, %28 : vector<8x256xf32>
    %30 = vector.broadcast %27 : vector<1x256xf32> to vector<8x256xf32>
    %31 = arith.addf %29, %30 : vector<8x256xf32>
    %cst_10 = arith.constant 0.000000e+00 : f32
    %32 = vector.broadcast %cst_10 : f32 to vector<8x256xf32>
    %33 = arith.maximumf %31, %32 : vector<8x256xf32>
    %34 = arith.truncf %33 : vector<8x256xf32> to vector<8x256xbf16>
    %c0_11 = arith.constant 0 : index
    %c0_12 = arith.constant 0 : index
    %35 = vector.load %arg4[%c0_11, %c0_12] : memref<8x256xbf16, #tpu.memory_space<vmem>>, vector<8x256xbf16>
    tpu.vector_store %arg4[%c0_11, %c0_12], %34 {strides = array<i32>} : memref<8x256xbf16, #tpu.memory_space<vmem>>, vector<8x256xbf16>,
    return
  }
  func.func @transform_0(%arg0: i32) -> (i32, i32) {
    %c0_i32 = arith.constant 0 : i32
    %c0_i32_0 = arith.constant 0 : i32
    %c0_i32_1 = arith.constant 0 : i32
    return %c0_i32, %c0_i32_0 : i32, i32
  }
  func.func @transform_1(%arg0: i32) -> (i32, i32) {
    %c0_i32 = arith.constant 0 : i32
    %c0_i32_0 = arith.constant 0 : i32
    return %c0_i32, %arg0 : i32, i32
  }
  func.func @transform_2(%arg0: i32) -> (i32, i32) {
    %c0_i32 = arith.constant 0 : i32
    %c0_i32_0 = arith.constant 0 : i32
    %c0_i32_1 = arith.constant 0 : i32
    return %c0_i32, %c0_i32_0 : i32, i32
  }
  func.func @transform_3(%arg0: i32) -> (i32, i32) {
    %c0_i32 = arith.constant 0 : i32
    %c0_i32_0 = arith.constant 0 : i32
    return %c0_i32, %arg0 : i32, i32
  }
}

module attributes {stable_mosaic.version = 11 : i64} {
  func.func @_linear_bn_kernel(%arg0: i32, %arg1: memref<8x256xbf16, #tpu.memory_space<vmem>>, %arg2: memref<256x256xbf16, #tpu.memory_space<vmem>>, %arg3: memref<2x256xf32, #tpu.memory_space<vmem>>, %arg4: memref<8x256xf32, #tpu.memory_space<vmem>>) attributes {dimension_semantics = [#tpu.dimension_semantics<parallel>], iteration_bounds = array<i64: 1>, scalar_prefetch = 0 : i64, scratch_operands = 0 : i64, tpu.core_type = #tpu.core_type<tc>, window_params = [{pipeline_mode = #tpu.pipeline_mode<synchronous>, transform_indices = @transform_0, window_bounds = array<i64: 8, 256>}, {transform_indices = @transform_1, window_bounds = array<i64: 256, 256>}, {pipeline_mode = #tpu.pipeline_mode<synchronous>, transform_indices = @transform_2, window_bounds = array<i64: 2, 256>}, {transform_indices = @transform_3, window_bounds = array<i64: 8, 256>}]} {
    %c0 = arith.constant 0 : index
    %c0_0 = arith.constant 0 : index
    %0 = vector.load %arg1[%c0, %c0_0] : memref<8x256xbf16, #tpu.memory_space<vmem>>, vector<8x256xbf16>
    %c0_1 = arith.constant 0 : index
    %c0_2 = arith.constant 0 : index
    %1 = vector.load %arg2[%c0_1, %c0_2] : memref<256x256xbf16, #tpu.memory_space<vmem>>, vector<256x256xbf16>
    %cst = arith.constant dense<0.000000e+00> : vector<8x256xf32>
    %2 = tpu.matmul %0, %1, %cst {dimension_numbers = #tpu.dot_dimension_numbers<[1], [0], [0], [1], [0, 0, 1, 1], [], []>} : vector<8x256xbf16>, vector<256x256xbf16>, vector<8x256xf32> -> vector<8x256xf32>
    %c256_i32 = arith.constant 256 : i32
    %3 = arith.muli %arg0, %c256_i32 : i32
    %4 = tpu.assume_multiple %3, 256 : i32
    %c0_3 = arith.constant 0 : index
    %5 = arith.index_cast %4 : i32 to index
    %6 = vector.load %arg3[%c0_3, %5] : memref<2x256xf32, #tpu.memory_space<vmem>>, vector<2x256xf32>
    %7 = vector.extract_strided_slice %6 {offsets = [0, 0], sizes = [1, 256], strides = [1, 1]} : vector<2x256xf32> to vector<1x256xf32>
    %8 = vector.extract_strided_slice %6 {offsets = [1, 0], sizes = [1, 256], strides = [1, 1]} : vector<2x256xf32> to vector<1x256xf32>
    %cst_4 = arith.constant dense<0.000000e+00> : vector<256xf32>
    %9 = vector.multi_reduction <add>, %2, %cst_4 [0] : vector<8x256xf32> to vector<256xf32>
    %10 = vector.shape_cast %9 : vector<256xf32> to vector<1x256xf32>
    %cst_5 = arith.constant 1.250000e-01 : f32
    %11 = vector.broadcast %cst_5 : f32 to vector<1x256xf32>
    %12 = arith.mulf %10, %11 : vector<1x256xf32>
    %13 = arith.mulf %2, %2 : vector<8x256xf32>
    %cst_6 = arith.constant dense<0.000000e+00> : vector<256xf32>
    %14 = vector.multi_reduction <add>, %13, %cst_6 [0] : vector<8x256xf32> to vector<256xf32>
    %15 = vector.shape_cast %14 : vector<256xf32> to vector<1x256xf32>
    %cst_7 = arith.constant 1.250000e-01 : f32
    %16 = vector.broadcast %cst_7 : f32 to vector<1x256xf32>
    %17 = arith.mulf %15, %16 : vector<1x256xf32>
    %18 = arith.mulf %12, %12 : vector<1x256xf32>
    %19 = arith.subf %17, %18 : vector<1x256xf32>
    %cst_8 = arith.constant 0.000000e+00 : f32
    %20 = vector.broadcast %cst_8 : f32 to vector<1x256xf32>
    %21 = arith.maximumf %19, %20 : vector<1x256xf32>
    %cst_9 = arith.constant 9.99999974E-6 : f32
    %22 = vector.broadcast %cst_9 : f32 to vector<1x256xf32>
    %23 = arith.addf %21, %22 : vector<1x256xf32>
    %24 = math.rsqrt %23 : vector<1x256xf32>
    %25 = arith.mulf %7, %24 : vector<1x256xf32>
    %26 = arith.mulf %12, %25 : vector<1x256xf32>
    %27 = arith.subf %8, %26 : vector<1x256xf32>
    %28 = vector.broadcast %25 : vector<1x256xf32> to vector<8x256xf32>
    %29 = arith.mulf %2, %28 : vector<8x256xf32>
    %30 = vector.broadcast %27 : vector<1x256xf32> to vector<8x256xf32>
    %31 = arith.addf %29, %30 : vector<8x256xf32>
    %c0_10 = arith.constant 0 : index
    %c0_11 = arith.constant 0 : index
    %32 = vector.load %arg4[%c0_10, %c0_11] : memref<8x256xf32, #tpu.memory_space<vmem>>, vector<8x256xf32>
    tpu.vector_store %arg4[%c0_10, %c0_11], %31 {strides = array<i32>} : memref<8x256xf32, #tpu.memory_space<vmem>>, vector<8x256xf32>,
    return
  }
  func.func @transform_0(%arg0: i32) -> (i32, i32) {
    %c0_i32 = arith.constant 0 : i32
    %c0_i32_0 = arith.constant 0 : i32
    %c0_i32_1 = arith.constant 0 : i32
    return %c0_i32, %c0_i32_0 : i32, i32
  }
  func.func @transform_1(%arg0: i32) -> (i32, i32) {
    %c0_i32 = arith.constant 0 : i32
    %c0_i32_0 = arith.constant 0 : i32
    return %c0_i32, %arg0 : i32, i32
  }
  func.func @transform_2(%arg0: i32) -> (i32, i32) {
    %c0_i32 = arith.constant 0 : i32
    %c0_i32_0 = arith.constant 0 : i32
    %c0_i32_1 = arith.constant 0 : i32
    return %c0_i32, %c0_i32_0 : i32, i32
  }
  func.func @transform_3(%arg0: i32) -> (i32, i32) {
    %c0_i32 = arith.constant 0 : i32
    %c0_i32_0 = arith.constant 0 : i32
    return %c0_i32, %arg0 : i32, i32
  }
}

</mosaic_0001>

<bundles_post_ra>
// kernel: projection_mlp_forward.3
= control target key start
LH: loop header
LB: loop body
LE: loop exit
PB: predicated region body
PF: predicated region fallthrough
CT: control target
= control target key end

     0   :  { %8 = vsyncpa [#allocation3], 0  ;;  %s627_s0 = inlined_call_operand.vmem [shape: bf16[8,256], index: 0, kind: input, shape index: {}]   ;;  %s628_s1 = inlined_call_operand.hbm [shape: bf16[256,256], index: 1, kind: input, shape index: {}]   ;;  %s629_s2 = inlined_call_operand.hbm [shape: f32[2,256], index: 2, kind: input, shape index: {}]   ;;  %s630_s3 = inlined_call_operand.vmem [shape: bf16[8,256], index: 3, kind: output, shape index: {}]  }
   0x1   :  { %9 = vsyncpa [#allocation5], 0  ;;  %s558_s12 = smov [#allocation2]   ;;  %s510_s16 = scalar_lea.hbm %s628_s1, 4096 }
   0x2   :  { %s17_s13 = sshll.u32 %s558_s12, 4  ;;  %p511_p0 = scmp.ne.s32.totalorder %s628_s1, %s510_s16  ;;  %s18_s13 = int_to_ptr.vmem [resolvable:$true] %s17_s13 }
   0x3   :  { %p514_p1 = scmp.lt.u32.totalorder %s510_s16, %s628_s1 }
   0x5   :  { %p516_p2 = pnand %p514_p1, %p511_p0 }
   0x7   :  { %519 = shalt.err (!%p516_p2)
}
   0x8   :  { %s520_s21 = scalar_lea.vmem %s18_s13, 4096  ;;  %p525_p4 = scmp.lt.s32.totalorder %s18_s13, %s18_s13 }
   0x9   :  { %p521_p3 = scmp.ne.s32.totalorder %s18_s13, %s520_s21  ;;  %p526_p5 = scmp.lt.s32.totalorder %s520_s21, %s520_s21 }
   0xb   :  { %p527_p6 = por %p526_p5, %p525_p4 }
   0xd   :  { %p528_p7 = pnand %p527_p6, %p521_p3 }
   0xf   :  { %531 = shalt.err (!%p528_p7)
}
  0x10   :  { %s559_s22 = smov 128   ;;  %s560_s23 = smov 8  }
  0x11   :  { %23 = dma.hbm_to_vmem [thread:$0]  %s628_s1, 4096, %s18_s13, [#allocation3], %s559_s22, %s559_s22, %s560_s23  }
  0x12   :  { %s561_s26 = smov [#allocation4]   ;;  %s532_s30 = scalar_lea.hbm %s629_s2, 64 }
  0x13   :  { %s30_s27 = sshll.u32 %s561_s26, 4  ;;  %p533_p8 = scmp.ne.s32.totalorder %s629_s2, %s532_s30  ;;  %s31_s27 = int_to_ptr.vmem [resolvable:$true] %s30_s27 }
  0x14   :  { %p536_p9 = scmp.lt.u32.totalorder %s532_s30, %s629_s2 }
  0x16   :  { %p538_p10 = pnand %p536_p9, %p533_p8 }
  0x18   :  { %541 = shalt.err (!%p538_p10)
}
  0x19   :  { %s542_s8 = scalar_lea.vmem %s31_s27, 64  ;;  %p547_p12 = scmp.lt.s32.totalorder %s31_s27, %s31_s27 }
  0x1a   :  { %p543_p11 = scmp.ne.s32.totalorder %s31_s27, %s542_s8  ;;  %p548_p13 = scmp.lt.s32.totalorder %s542_s8, %s542_s8 }
  0x1c   :  { %p549_p0 = por %p548_p13, %p547_p12 }
  0x1e   :  { %p550_p1 = pnand %p549_p0, %p543_p11 }
  0x20   :  { %553 = shalt.err (!%p550_p1)
}
  0x21   :  { %33 = dma.hbm_to_vmem [thread:$0]  %s629_s2, 64, %s31_s27, [#allocation5]  }
  0x22   :  { %554 = dma.done.wait [#allocation3], 4096  }
  0x23   :  { %555 = vsyncadd [#allocation3], 4294963200 }
  0x24   :  { %556 = dma.done.wait [#allocation5], 64  }
  0x25   :  { %557 = vsyncadd [#allocation5], 4294967232  ;;  %v456_v0 = vld [vmem:[#allocation2 + $0x4] ss:$8 sps:$4 sm:$0xff]   ;;  %v458_v1 = vld [vmem:[#allocation2] ss:$8 sps:$4 sm:$0xff]  }
  0x26   :  { %240 = vmatprep.subr.bf16.mxu0 %v456_v0  ;;  %v459_v2 = vld [vmem:[#allocation2 + $0x14] ss:$8 sps:$4 sm:$0xff]   ;;  %v461_v3 = vld [vmem:[#allocation2 + $0x10] ss:$8 sps:$4 sm:$0xff]   ;;  %v462_v4 = vld [vmem:[#allocation2 + $0x24] ss:$8 sps:$4 sm:$0xff]  }
  0x27   :  { %241 = vmatpush1.bf16.msra.mxu0 %v458_v1  ;;  %v464_v5 = vld [vmem:[#allocation2 + $0x20] ss:$8 sps:$4 sm:$0xff]   ;;  %v465_v6 = vld [vmem:[#allocation2 + $0x34] ss:$8 sps:$4 sm:$0xff]   ;;  %v467_v7 = vld [vmem:[#allocation2 + $0x30] ss:$8 sps:$4 sm:$0xff]  }
  0x28   :  { %242 = vmatprep.subr.bf16.mxu0 %v459_v2  ;;  %v468_v8 = vld [vmem:[#allocation2 + $0x44] ss:$8 sps:$4 sm:$0xff]   ;;  %v470_v9 = vld [vmem:[#allocation2 + $0x40] ss:$8 sps:$4 sm:$0xff]   ;;  %v471_v10 = vld [vmem:[#allocation2 + $0x54] ss:$8 sps:$4 sm:$0xff]  }
  0x29   :  { %v473_v11 = vld [vmem:[#allocation2 + $0x50] ss:$8 sps:$4 sm:$0xff]   ;;  %v474_v12 = vld [vmem:[#allocation2 + $0x64] ss:$8 sps:$4 sm:$0xff]   ;;  %v476_v15 = vld [vmem:[#allocation2 + $0x60] ss:$8 sps:$4 sm:$0xff]  }
  0x2a   :  { %v40_v13 = vld [vmem:[%s627_s0] sm:$0xff]  ;;  %v477_v16 = vld [vmem:[#allocation2 + $0x74] ss:$8 sps:$4 sm:$0xff]   ;;  %v479_v17 = vld [vmem:[#allocation2 + $0x70] ss:$8 sps:$4 sm:$0xff]  }
  0x2b   :  { %243 = vmatpush1.bf16.msra.mxu0 %v461_v3  ;;  %v416_v14 = vcombine.high %v40_v13, %v40_v13  ;;  %v480_v18 = vld [vmem:[#allocation2 + $0x84] ss:$8 sps:$4 sm:$0xff]   ;;  %v482_v19 = vld [vmem:[#allocation2 + $0x80] ss:$8 sps:$4 sm:$0xff]   ;;  %v483_v20 = vld [vmem:[#allocation2 + $0x94] ss:$8 sps:$4 sm:$0xff]   ;;  %v415_v34 = vcombine.low %v40_v13, %v40_v13 }
  0x2c   :  { %244 = vmatprep.subr.bf16.mxu0 %v462_v4  ;;  %v485_v21 = vld [vmem:[#allocation2 + $0x90] ss:$8 sps:$4 sm:$0xff]   ;;  %v486_v22 = vld [vmem:[#allocation2 + $0xa4] ss:$8 sps:$4 sm:$0xff]   ;;  %v488_v23 = vld [vmem:[#allocation2 + $0xa0] ss:$8 sps:$4 sm:$0xff]  }
  0x2d   :  { %272 = vmatprep.mubr.bf16.mxu0 %v416_v14  ;;  %v489_v24 = vld [vmem:[#allocation2 + $0xb4] ss:$8 sps:$4 sm:$0xff]   ;;  %v491_v25 = vld [vmem:[#allocation2 + $0xb0] ss:$8 sps:$4 sm:$0xff]   ;;  %v492_v26 = vld [vmem:[#allocation2 + $0xc4] ss:$8 sps:$4 sm:$0xff]  }
  0x2e   :  { %v494_v27 = vld [vmem:[#allocation2 + $0xc0] ss:$8 sps:$4 sm:$0xff]   ;;  %v495_v28 = vld [vmem:[#allocation2 + $0xd4] ss:$8 sps:$4 sm:$0xff]   ;;  %v497_v29 = vld [vmem:[#allocation2 + $0xd0] ss:$8 sps:$4 sm:$0xff]  }
  0x2f   :  { %245 = vmatpush1.bf16.msra.mxu0 %v464_v5  ;;  %v498_v30 = vld [vmem:[#allocation2 + $0xe4] ss:$8 sps:$4 sm:$0xff]   ;;  %v500_v31 = vld [vmem:[#allocation2 + $0xe0] ss:$8 sps:$4 sm:$0xff]   ;;  %v501_v32 = vld [vmem:[#allocation2 + $0xf4] ss:$8 sps:$4 sm:$0xff]  }
  0x30   :  { %246 = vmatprep.subr.bf16.mxu0 %v465_v6  ;;  %v503_v33 = vld [vmem:[#allocation2 + $0xf0] ss:$8 sps:$4 sm:$0xff]   ;;  %v562_v13 = vmov 1983009808  }
  0x31   :  { %v331_v14 = vunpack.c.l.s4 %v562_v13 }
  0x33   :  { %247 = vmatpush1.bf16.msra.mxu0 %v467_v7 }
  0x34   :  { %248 = vmatprep.subr.bf16.mxu0 %v468_v8 }
  0x37   :  { %249 = vmatpush1.bf16.msra.mxu0 %v470_v9 }
  0x38   :  { %250 = vmatprep.subr.bf16.mxu0 %v471_v10 }
  0x3b   :  { %251 = vmatpush1.bf16.msra.mxu0 %v473_v11 }
  0x3c   :  { %252 = vmatprep.subr.bf16.mxu0 %v474_v12 }
  0x3f   :  { %253 = vmatpush1.bf16.msra.mxu0 %v476_v15  ;;  %v333_v15 = vlaneseq }
  0x40   :  { %254 = vmatprep.subr.bf16.mxu0 %v477_v16  ;;  %v332_v16 = vunpack.c.0.s8 %v331_v14 }
  0x43   :  { %255 = vmatpush1.bf16.msra.mxu0 %v479_v17  ;;  %v334_v17 = vshrl.u32 %v333_v15, 7 }
  0x44   :  { %256 = vmatprep.subr.bf16.mxu0 %v480_v18 }
  0x47   :  { %257 = vmatpush1.bf16.msra.mxu0 %v482_v19  ;;  %v335_v19 = vsub.s32 %v332_v16, %v334_v17 }
  0x48   :  { %258 = vmatprep.subr.bf16.mxu0 %v483_v20 }
  0x4b   :  { %259 = vmatpush1.bf16.msra.mxu0 %v485_v21 }
  0x4c   :  { %260 = vmatprep.subr.bf16.mxu0 %v486_v22  ;;  %v286_v22 = vld [vmem:[#allocation4] sm:$0xf] }
  0x4f   :  { %261 = vmatpush1.bf16.msra.mxu0 %v488_v23 }
  0x50   :  { %262 = vmatprep.subr.bf16.mxu0 %v489_v24  ;;  %v342_v24 = vsub.s32 0, %v334_v17 }
  0x53   :  { %263 = vmatpush1.bf16.msra.mxu0 %v491_v25  ;;  %v346_v25 = vsub.s32 2, %v334_v17 }
  0x54   :  { %264 = vmatprep.subr.bf16.mxu0 %v492_v26 }
  0x57   :  { %265 = vmatpush1.bf16.msra.mxu0 %v494_v27 }
  0x58   :  { %266 = vmatprep.subr.bf16.mxu0 %v495_v28 }
  0x5b   :  { %267 = vmatpush1.bf16.msra.mxu0 %v497_v29 }
  0x5c   :  { %268 = vmatprep.subr.bf16.mxu0 %v498_v30 }
  0x5f   :  { %269 = vmatpush1.bf16.msra.mxu0 %v500_v31 }
  0x60   :  { %270 = vmatprep.subr.bf16.mxu0 %v501_v32 }
  0x63   :  { %271 = vmatpush1.bf16.msra.mxu0 %v503_v33 }
  0x66   :  { %273 = vmatmul.mubr.bf16.vlgmr.msra.gmra.mrb[0].mxu0 %v415_v34 }
 0x139   :  { %v610_v35 = vpop.f32.mrb[0].mxu0 }
 0x13a   :  { %v287_v36 = vrot.slane %v610_v35, 4  ;;  %v301_v37 = vmul.f32 %v610_v35, %v610_v35  ;;  %v615_v38 = vpop.f32.mrb[1].mxu0 }
 0x13b   :  { %v293_v39 = vrot.slane %v615_v38, 4  ;;  %v302_v40 = vmul.f32 %v615_v38, %v615_v38  ;;  %v278_v41 = vpop.f32.mrb[2].mxu0 }
 0x13c   :  { %v288_v42 = vadd.f32 %v287_v36, %v610_v35  ;;  %v303_v43 = vrot.slane %v301_v37, 4  ;;  %v279_v44 = vpop.f32.mrb[3].mxu0  ;;  %v382_v41 = vsub.s32 3, %v334_v17 }
 0x13d   :  { %v294_v45 = vadd.f32 %v293_v39, %v615_v38  ;;  %v309_v46 = vrot.slane %v302_v40, 4 }
 0x13e   :  { %v289_v47 = vrot.slane %v288_v42, 2  ;;  %v304_v48 = vadd.f32 %v303_v43, %v301_v37 }
 0x13f   :  { %v295_v49 = vrot.slane %v294_v45, 2  ;;  %v310_v50 = vadd.f32 %v309_v46, %v302_v40  ;;  %v378_v40 = vsub.s32 1, %v334_v17 }
 0x140   :  { %v290_v51 = vadd.f32 %v289_v47, %v288_v42  ;;  %v305_v52 = vrot.slane %v304_v48, 2 }
 0x141   :  { %v296_v53 = vadd.f32 %v295_v49, %v294_v45  ;;  %v311_v54 = vrot.slane %v310_v50, 2 }
 0x142   :  { %v291_v55 = vrot.slane %v290_v51, 1  ;;  %v306_v56 = vadd.f32 %v305_v52, %v304_v48 }
 0x143   :  { %v297_v57 = vrot.slane %v296_v53, 1  ;;  %v312_v58 = vadd.f32 %v311_v54, %v310_v50 }
 0x144   :  { %v292_v59 = vadd.f32 %v291_v55, %v290_v51  ;;  %v307_v60 = vrot.slane %v306_v56, 1 }
 0x145   :  { %v298_v61 = vadd.f32 %v297_v57, %v296_v53  ;;  %v313_v62 = vrot.slane %v312_v58, 1 }
 0x146   :  { %v299_v63 = vmul.f32 0.125, %v292_v59  ;;  %v308_v0 = vadd.f32 %v307_v60, %v306_v56 }
 0x147   :  { %v300_v1 = vmul.f32 0.125, %v298_v61  ;;  %v314_v2 = vadd.f32 %v313_v62, %v312_v58 }
 0x148   :  { %v315_v3 = vmul.f32 0.125, %v308_v0  ;;  %v317_v4 = vmul.f32 %v299_v63, %v299_v63 }
 0x149   :  { %v316_v5 = vmul.f32 0.125, %v314_v2  ;;  %v318_v6 = vmul.f32 %v300_v1, %v300_v1 }
 0x14a   :  { %v319_v7 = vsub.f32 %v315_v3, %v317_v4 }
 0x14b   :  { %v320_v8 = vsub.f32 %v316_v5, %v318_v6 }
 0x14c   :  { %v321_v9 = vmax.f32 %v319_v7, 0.0 }
 0x14d   :  { %v322_v10 = vmax.f32 %v320_v8, 0.0 }
 0x14e   :  { %v323_v11 = vadd.f32 1e-05, %v321_v9 }
 0x14f   :  { %v324_v12 = vadd.f32 1e-05, %v322_v10 }
 0x150   :  { %506 = vrsqrt.f32 %v323_v11 }
 0x151   :  { %508 = vrsqrt.f32 %v324_v12 }
 0x15a   :  { %v507_v18 = vpop.eup %506 }
 0x15b   :  { %v509_v20 = vpop.eup %508 }
 0x15c   :  { %v329_v21 = vcombine.low %v507_v18, %v509_v20 }
 0x15e   :  { %v336_v23 = vrot.slane %v329_v21, %v335_v19 }
 0x160   :  { %v338_v26 = vmul.f32 %v336_v23, %v286_v22 }
 0x162   :  { %v343_v27 = vrot.slane %v338_v26, %v342_v24  ;;  %v347_v28 = vrot.slane %v338_v26, %v346_v25 }
 0x164   :  { %v350_v29 = vmul.f32 %v343_v27, %v299_v63  ;;  %v351_v30 = vmul.f32 %v347_v28, %v300_v1  ;;  %v368_v31 = vrot.slane %v343_v27, %v342_v24  ;;  %v372_v32 = vrot.slane %v347_v28, %v342_v24 }
 0x166   :  { %v354_v33 = vcombine.low %v350_v29, %v351_v30  ;;  %v373_v34 = vmul.f32 %v368_v31, %v610_v35  ;;  %v374_v36 = vmul.f32 %v372_v32, %v615_v38 }
 0x168   :  { %v361_v37 = vrot.slane %v354_v33, %v335_v19 }
 0x16a   :  { %v362_v39 = vrot.slane %v361_v37, 7 }
 0x16c   :  { %v364_v42 = vsub.f32 %v286_v22, %v362_v39 }
 0x16e   :  { %v379_v43 = vrot.slane %v364_v42, %v378_v40  ;;  %v383_v44 = vrot.slane %v364_v42, %v382_v41 }
 0x170   :  { %v389_v45 = vrot.slane %v379_v43, %v378_v40  ;;  %v393_v46 = vrot.slane %v383_v44, %v378_v40 }
 0x172   :  { %v394_v47 = vadd.f32 %v389_v45, %v373_v34  ;;  %v395_v48 = vadd.f32 %v393_v46, %v374_v36 }
 0x174   :  { %v396_v49 = vmax.f32 %v394_v47, 0.0  ;;  %v397_v50 = vmax.f32 %v395_v48, 0.0 }
 0x176   :  { %v450_v51 = vpack.c.bf16 %v397_v50, %v396_v49 }
 0x178   :  { %406 = vst [vmem:[%s630_s3] sm:$0xff] %v450_v51 }
 0x179   :  { %411 = vsyncpa [#allocation3], 1 }
 0x17a   :  { %412 = vsyncpa [#allocation5], 1 }

// kernel: projection_mlp_forward.4
= control target key start
LH: loop header
LB: loop body
LE: loop exit
PB: predicated region body
PF: predicated region fallthrough
CT: control target
= control target key end

     0   :  { %s618_s1 = inlined_call_operand.vmem [shape: bf16[256,256], index: 1, kind: input, shape index: {}]   ;;  %s619_s0 = inlined_call_operand.vmem [shape: bf16[8,256], index: 0, kind: input, shape index: {}]   ;;  %s620_s2 = inlined_call_operand.vmem [shape: f32[2,256], index: 2, kind: input, shape index: {}]   ;;  %s621_s3 = inlined_call_operand.vmem [shape: bf16[8,256], index: 3, kind: output, shape index: {}]  }
   0x1   :  { %v424_v0 = vld [vmem:[%s618_s1 + $0x4] ss:$8 sps:$4 sm:$0xff]   ;;  %v426_v1 = vld [vmem:[%s618_s1] ss:$8 sps:$4 sm:$0xff]   ;;  %v427_v2 = vld [vmem:[%s618_s1 + $0x14] ss:$8 sps:$4 sm:$0xff]  }
   0x2   :  { %214 = vmatprep.subr.bf16.mxu0 %v424_v0  ;;  %v429_v3 = vld [vmem:[%s618_s1 + $0x10] ss:$8 sps:$4 sm:$0xff]   ;;  %v430_v4 = vld [vmem:[%s618_s1 + $0x24] ss:$8 sps:$4 sm:$0xff]   ;;  %v432_v5 = vld [vmem:[%s618_s1 + $0x20] ss:$8 sps:$4 sm:$0xff]  }
   0x3   :  { %215 = vmatpush1.bf16.msra.mxu0 %v426_v1  ;;  %v433_v6 = vld [vmem:[%s618_s1 + $0x34] ss:$8 sps:$4 sm:$0xff]   ;;  %v435_v7 = vld [vmem:[%s618_s1 + $0x30] ss:$8 sps:$4 sm:$0xff]   ;;  %v436_v8 = vld [vmem:[%s618_s1 + $0x44] ss:$8 sps:$4 sm:$0xff]  }
   0x4   :  { %216 = vmatprep.subr.bf16.mxu0 %v427_v2  ;;  %v438_v9 = vld [vmem:[%s618_s1 + $0x40] ss:$8 sps:$4 sm:$0xff]   ;;  %v439_v10 = vld [vmem:[%s618_s1 + $0x54] ss:$8 sps:$4 sm:$0xff]   ;;  %v441_v11 = vld [vmem:[%s618_s1 + $0x50] ss:$8 sps:$4 sm:$0xff]  }
   0x5   :  { %v442_v12 = vld [vmem:[%s618_s1 + $0x64] ss:$8 sps:$4 sm:$0xff]   ;;  %v444_v15 = vld [vmem:[%s618_s1 + $0x60] ss:$8 sps:$4 sm:$0xff]   ;;  %v445_v16 = vld [vmem:[%s618_s1 + $0x74] ss:$8 sps:$4 sm:$0xff]  }
   0x6   :  { %v14_v13 = vld [vmem:[%s619_s0] sm:$0xff]  ;;  %v447_v17 = vld [vmem:[%s618_s1 + $0x70] ss:$8 sps:$4 sm:$0xff]   ;;  %v451_v20 = vld [vmem:[%s618_s1 + $0x94] ss:$8 sps:$4 sm:$0xff]  }
   0x7   :  { %217 = vmatpush1.bf16.msra.mxu0 %v429_v3  ;;  %v388_v14 = vcombine.high %v14_v13, %v14_v13  ;;  %v448_v18 = vld [vmem:[%s618_s1 + $0x84] ss:$8 sps:$4 sm:$0xff]   ;;  %v450_v19 = vld [vmem:[%s618_s1 + $0x80] ss:$8 sps:$4 sm:$0xff]   ;;  %v453_v21 = vld [vmem:[%s618_s1 + $0x90] ss:$8 sps:$4 sm:$0xff]   ;;  %v387_v34 = vcombine.low %v14_v13, %v14_v13 }
   0x8   :  { %218 = vmatprep.subr.bf16.mxu0 %v430_v4  ;;  %v454_v22 = vld [vmem:[%s618_s1 + $0xa4] ss:$8 sps:$4 sm:$0xff]   ;;  %v456_v23 = vld [vmem:[%s618_s1 + $0xa0] ss:$8 sps:$4 sm:$0xff]   ;;  %v457_v24 = vld [vmem:[%s618_s1 + $0xb4] ss:$8 sps:$4 sm:$0xff]  }
   0x9   :  { %246 = vmatprep.mubr.bf16.mxu0 %v388_v14  ;;  %v459_v25 = vld [vmem:[%s618_s1 + $0xb0] ss:$8 sps:$4 sm:$0xff]   ;;  %v460_v26 = vld [vmem:[%s618_s1 + $0xc4] ss:$8 sps:$4 sm:$0xff]   ;;  %v462_v27 = vld [vmem:[%s618_s1 + $0xc0] ss:$8 sps:$4 sm:$0xff]  }
   0xa   :  { %v463_v28 = vld [vmem:[%s618_s1 + $0xd4] ss:$8 sps:$4 sm:$0xff]   ;;  %v465_v29 = vld [vmem:[%s618_s1 + $0xd0] ss:$8 sps:$4 sm:$0xff]   ;;  %v466_v30 = vld [vmem:[%s618_s1 + $0xe4] ss:$8 sps:$4 sm:$0xff]  }
   0xb   :  { %219 = vmatpush1.bf16.msra.mxu0 %v432_v5  ;;  %v468_v31 = vld [vmem:[%s618_s1 + $0xe0] ss:$8 sps:$4 sm:$0xff]   ;;  %v469_v32 = vld [vmem:[%s618_s1 + $0xf4] ss:$8 sps:$4 sm:$0xff]   ;;  %v471_v33 = vld [vmem:[%s618_s1 + $0xf0] ss:$8 sps:$4 sm:$0xff]  }
   0xc   :  { %220 = vmatprep.subr.bf16.mxu0 %v433_v6  ;;  %v478_v13 = vmov 1983009808  }
   0xd   :  { %v305_v14 = vunpack.c.l.s4 %v478_v13 }
   0xf   :  { %221 = vmatpush1.bf16.msra.mxu0 %v435_v7 }
  0x10   :  { %222 = vmatprep.subr.bf16.mxu0 %v436_v8 }
  0x13   :  { %223 = vmatpush1.bf16.msra.mxu0 %v438_v9 }
  0x14   :  { %224 = vmatprep.subr.bf16.mxu0 %v439_v10 }
  0x17   :  { %225 = vmatpush1.bf16.msra.mxu0 %v441_v11 }
  0x18   :  { %226 = vmatprep.subr.bf16.mxu0 %v442_v12 }
  0x1b   :  { %227 = vmatpush1.bf16.msra.mxu0 %v444_v15  ;;  %v307_v15 = vlaneseq }
  0x1c   :  { %228 = vmatprep.subr.bf16.mxu0 %v445_v16  ;;  %v306_v16 = vunpack.c.0.s8 %v305_v14 }
  0x1f   :  { %229 = vmatpush1.bf16.msra.mxu0 %v447_v17  ;;  %v308_v17 = vshrl.u32 %v307_v15, 7 }
  0x20   :  { %230 = vmatprep.subr.bf16.mxu0 %v448_v18 }
  0x23   :  { %231 = vmatpush1.bf16.msra.mxu0 %v450_v19  ;;  %v309_v19 = vsub.s32 %v306_v16, %v308_v17 }
  0x24   :  { %232 = vmatprep.subr.bf16.mxu0 %v451_v20 }
  0x27   :  { %233 = vmatpush1.bf16.msra.mxu0 %v453_v21 }
  0x28   :  { %234 = vmatprep.subr.bf16.mxu0 %v454_v22  ;;  %v260_v22 = vld [vmem:[%s620_s2] sm:$0xf] }
  0x2b   :  { %235 = vmatpush1.bf16.msra.mxu0 %v456_v23 }
  0x2c   :  { %236 = vmatprep.subr.bf16.mxu0 %v457_v24  ;;  %v316_v24 = vsub.s32 0, %v308_v17 }
  0x2f   :  { %237 = vmatpush1.bf16.msra.mxu0 %v459_v25  ;;  %v320_v25 = vsub.s32 2, %v308_v17 }
  0x30   :  { %238 = vmatprep.subr.bf16.mxu0 %v460_v26 }
  0x33   :  { %239 = vmatpush1.bf16.msra.mxu0 %v462_v27 }
  0x34   :  { %240 = vmatprep.subr.bf16.mxu0 %v463_v28 }
  0x37   :  { %241 = vmatpush1.bf16.msra.mxu0 %v465_v29 }
  0x38   :  { %242 = vmatprep.subr.bf16.mxu0 %v466_v30 }
  0x3b   :  { %243 = vmatpush1.bf16.msra.mxu0 %v468_v31 }
  0x3c   :  { %244 = vmatprep.subr.bf16.mxu0 %v469_v32 }
  0x3f   :  { %245 = vmatpush1.bf16.msra.mxu0 %v471_v33 }
  0x42   :  { %247 = vmatmul.mubr.bf16.vlgmr.msra.gmra.mrb[0].mxu0 %v387_v34 }
 0x115   :  { %v598_v35 = vpop.f32.mrb[0].mxu0 }
 0x116   :  { %v261_v36 = vrot.slane %v598_v35, 4  ;;  %v275_v37 = vmul.f32 %v598_v35, %v598_v35  ;;  %v603_v38 = vpop.f32.mrb[1].mxu0 }
 0x117   :  { %v267_v39 = vrot.slane %v603_v38, 4  ;;  %v276_v40 = vmul.f32 %v603_v38, %v603_v38  ;;  %v252_v41 = vpop.f32.mrb[2].mxu0 }
 0x118   :  { %v262_v42 = vadd.f32 %v261_v36, %v598_v35  ;;  %v277_v43 = vrot.slane %v275_v37, 4  ;;  %v253_v44 = vpop.f32.mrb[3].mxu0  ;;  %v356_v41 = vsub.s32 3, %v308_v17 }
 0x119   :  { %v268_v45 = vadd.f32 %v267_v39, %v603_v38  ;;  %v283_v46 = vrot.slane %v276_v40, 4 }
 0x11a   :  { %v263_v47 = vrot.slane %v262_v42, 2  ;;  %v278_v48 = vadd.f32 %v277_v43, %v275_v37 }
 0x11b   :  { %v269_v49 = vrot.slane %v268_v45, 2  ;;  %v284_v50 = vadd.f32 %v283_v46, %v276_v40  ;;  %v352_v40 = vsub.s32 1, %v308_v17 }
 0x11c   :  { %v264_v51 = vadd.f32 %v263_v47, %v262_v42  ;;  %v279_v52 = vrot.slane %v278_v48, 2 }
 0x11d   :  { %v270_v53 = vadd.f32 %v269_v49, %v268_v45  ;;  %v285_v54 = vrot.slane %v284_v50, 2 }
 0x11e   :  { %v265_v55 = vrot.slane %v264_v51, 1  ;;  %v280_v56 = vadd.f32 %v279_v52, %v278_v48 }
 0x11f   :  { %v271_v57 = vrot.slane %v270_v53, 1  ;;  %v286_v58 = vadd.f32 %v285_v54, %v284_v50 }
 0x120   :  { %v266_v59 = vadd.f32 %v265_v55, %v264_v51  ;;  %v281_v60 = vrot.slane %v280_v56, 1 }
 0x121   :  { %v272_v61 = vadd.f32 %v271_v57, %v270_v53  ;;  %v287_v62 = vrot.slane %v286_v58, 1 }
 0x122   :  { %v273_v63 = vmul.f32 0.125, %v266_v59  ;;  %v282_v0 = vadd.f32 %v281_v60, %v280_v56 }
 0x123   :  { %v274_v1 = vmul.f32 0.125, %v272_v61  ;;  %v288_v2 = vadd.f32 %v287_v62, %v286_v58 }
 0x124   :  { %v289_v3 = vmul.f32 0.125, %v282_v0  ;;  %v291_v4 = vmul.f32 %v273_v63, %v273_v63 }
 0x125   :  { %v290_v5 = vmul.f32 0.125, %v288_v2  ;;  %v292_v6 = vmul.f32 %v274_v1, %v274_v1 }
 0x126   :  { %v293_v7 = vsub.f32 %v289_v3, %v291_v4 }
 0x127   :  { %v294_v8 = vsub.f32 %v290_v5, %v292_v6 }
 0x128   :  { %v295_v9 = vmax.f32 %v293_v7, 0.0 }
 0x129   :  { %v296_v10 = vmax.f32 %v294_v8, 0.0 }
 0x12a   :  { %v297_v11 = vadd.f32 1e-05, %v295_v9 }
 0x12b   :  { %v298_v12 = vadd.f32 1e-05, %v296_v10 }
 0x12c   :  { %474 = vrsqrt.f32 %v297_v11 }
 0x12d   :  { %476 = vrsqrt.f32 %v298_v12 }
 0x136   :  { %v475_v18 = vpop.eup %474 }
 0x137   :  { %v477_v20 = vpop.eup %476 }
 0x138   :  { %v303_v21 = vcombine.low %v475_v18, %v477_v20 }
 0x13a   :  { %v310_v23 = vrot.slane %v303_v21, %v309_v19 }
 0x13c   :  { %v312_v26 = vmul.f32 %v310_v23, %v260_v22 }
 0x13e   :  { %v317_v27 = vrot.slane %v312_v26, %v316_v24  ;;  %v321_v28 = vrot.slane %v312_v26, %v320_v25 }
 0x140   :  { %v324_v29 = vmul.f32 %v317_v27, %v273_v63  ;;  %v325_v30 = vmul.f32 %v321_v28, %v274_v1  ;;  %v342_v31 = vrot.slane %v317_v27, %v316_v24  ;;  %v346_v32 = vrot.slane %v321_v28, %v316_v24 }
 0x142   :  { %v328_v33 = vcombine.low %v324_v29, %v325_v30  ;;  %v347_v34 = vmul.f32 %v342_v31, %v598_v35  ;;  %v348_v36 = vmul.f32 %v346_v32, %v603_v38 }
 0x144   :  { %v335_v37 = vrot.slane %v328_v33, %v309_v19 }
 0x146   :  { %v336_v39 = vrot.slane %v335_v37, 7 }
 0x148   :  { %v338_v42 = vsub.f32 %v260_v22, %v336_v39 }
 0x14a   :  { %v353_v43 = vrot.slane %v338_v42, %v352_v40  ;;  %v357_v44 = vrot.slane %v338_v42, %v356_v41 }
 0x14c   :  { %v363_v45 = vrot.slane %v353_v43, %v352_v40  ;;  %v367_v46 = vrot.slane %v357_v44, %v352_v40 }
 0x14e   :  { %v368_v47 = vadd.f32 %v363_v45, %v347_v34  ;;  %v369_v48 = vadd.f32 %v367_v46, %v348_v36 }
 0x150   :  { %v370_v49 = vmax.f32 %v368_v47, 0.0  ;;  %v371_v50 = vmax.f32 %v369_v48, 0.0 }
 0x152   :  { %v422_v51 = vpack.c.bf16 %v371_v50, %v370_v49 }
 0x154   :  { %380 = vst [vmem:[%s621_s3] sm:$0xff] %v422_v51 }

// kernel: projection_mlp_forward.5
= control target key start
LH: loop header
LB: loop body
LE: loop exit
PB: predicated region body
PF: predicated region fallthrough
CT: control target
= control target key end

     0   :  { %s610_s1 = inlined_call_operand.vmem [shape: bf16[256,256], index: 1, kind: input, shape index: {}]   ;;  %s611_s0 = inlined_call_operand.vmem [shape: bf16[8,256], index: 0, kind: input, shape index: {}]   ;;  %s612_s2 = inlined_call_operand.vmem [shape: f32[2,256], index: 2, kind: input, shape index: {}]   ;;  %s613_s3 = inlined_call_operand.vmem [shape: f32[8,256], index: 3, kind: output, shape index: {}]  }
   0x1   :  { %v413_v0 = vld [vmem:[%s610_s1 + $0x4] ss:$8 sps:$4 sm:$0xff]   ;;  %v415_v1 = vld [vmem:[%s610_s1] ss:$8 sps:$4 sm:$0xff]   ;;  %v416_v2 = vld [vmem:[%s610_s1 + $0x14] ss:$8 sps:$4 sm:$0xff]  }
   0x2   :  { %214 = vmatprep.subr.bf16.mxu0 %v413_v0  ;;  %v418_v3 = vld [vmem:[%s610_s1 + $0x10] ss:$8 sps:$4 sm:$0xff]   ;;  %v419_v4 = vld [vmem:[%s610_s1 + $0x24] ss:$8 sps:$4 sm:$0xff]   ;;  %v421_v5 = vld [vmem:[%s610_s1 + $0x20] ss:$8 sps:$4 sm:$0xff]  }
   0x3   :  { %215 = vmatpush1.bf16.msra.mxu0 %v415_v1  ;;  %v422_v6 = vld [vmem:[%s610_s1 + $0x34] ss:$8 sps:$4 sm:$0xff]   ;;  %v424_v7 = vld [vmem:[%s610_s1 + $0x30] ss:$8 sps:$4 sm:$0xff]   ;;  %v425_v8 = vld [vmem:[%s610_s1 + $0x44] ss:$8 sps:$4 sm:$0xff]  }
   0x4   :  { %216 = vmatprep.subr.bf16.mxu0 %v416_v2  ;;  %v427_v9 = vld [vmem:[%s610_s1 + $0x40] ss:$8 sps:$4 sm:$0xff]   ;;  %v428_v10 = vld [vmem:[%s610_s1 + $0x54] ss:$8 sps:$4 sm:$0xff]   ;;  %v430_v11 = vld [vmem:[%s610_s1 + $0x50] ss:$8 sps:$4 sm:$0xff]  }
   0x5   :  { %v431_v12 = vld [vmem:[%s610_s1 + $0x64] ss:$8 sps:$4 sm:$0xff]   ;;  %v433_v15 = vld [vmem:[%s610_s1 + $0x60] ss:$8 sps:$4 sm:$0xff]   ;;  %v434_v16 = vld [vmem:[%s610_s1 + $0x74] ss:$8 sps:$4 sm:$0xff]  }
   0x6   :  { %v14_v13 = vld [vmem:[%s611_s0] sm:$0xff]  ;;  %v436_v17 = vld [vmem:[%s610_s1 + $0x70] ss:$8 sps:$4 sm:$0xff]   ;;  %v440_v20 = vld [vmem:[%s610_s1 + $0x94] ss:$8 sps:$4 sm:$0xff]  }
   0x7   :  { %217 = vmatpush1.bf16.msra.mxu0 %v418_v3  ;;  %v379_v14 = vcombine.high %v14_v13, %v14_v13  ;;  %v437_v18 = vld [vmem:[%s610_s1 + $0x84] ss:$8 sps:$4 sm:$0xff]   ;;  %v439_v19 = vld [vmem:[%s610_s1 + $0x80] ss:$8 sps:$4 sm:$0xff]   ;;  %v442_v21 = vld [vmem:[%s610_s1 + $0x90] ss:$8 sps:$4 sm:$0xff]   ;;  %v378_v34 = vcombine.low %v14_v13, %v14_v13 }
   0x8   :  { %218 = vmatprep.subr.bf16.mxu0 %v419_v4  ;;  %v443_v22 = vld [vmem:[%s610_s1 + $0xa4] ss:$8 sps:$4 sm:$0xff]   ;;  %v445_v23 = vld [vmem:[%s610_s1 + $0xa0] ss:$8 sps:$4 sm:$0xff]   ;;  %v446_v24 = vld [vmem:[%s610_s1 + $0xb4] ss:$8 sps:$4 sm:$0xff]  }
   0x9   :  { %246 = vmatprep.mubr.bf16.mxu0 %v379_v14  ;;  %v448_v25 = vld [vmem:[%s610_s1 + $0xb0] ss:$8 sps:$4 sm:$0xff]   ;;  %v449_v26 = vld [vmem:[%s610_s1 + $0xc4] ss:$8 sps:$4 sm:$0xff]   ;;  %v451_v27 = vld [vmem:[%s610_s1 + $0xc0] ss:$8 sps:$4 sm:$0xff]  }
   0xa   :  { %v452_v28 = vld [vmem:[%s610_s1 + $0xd4] ss:$8 sps:$4 sm:$0xff]   ;;  %v454_v29 = vld [vmem:[%s610_s1 + $0xd0] ss:$8 sps:$4 sm:$0xff]   ;;  %v455_v30 = vld [vmem:[%s610_s1 + $0xe4] ss:$8 sps:$4 sm:$0xff]  }
   0xb   :  { %219 = vmatpush1.bf16.msra.mxu0 %v421_v5  ;;  %v457_v31 = vld [vmem:[%s610_s1 + $0xe0] ss:$8 sps:$4 sm:$0xff]   ;;  %v458_v32 = vld [vmem:[%s610_s1 + $0xf4] ss:$8 sps:$4 sm:$0xff]   ;;  %v460_v33 = vld [vmem:[%s610_s1 + $0xf0] ss:$8 sps:$4 sm:$0xff]  }
   0xc   :  { %220 = vmatprep.subr.bf16.mxu0 %v422_v6  ;;  %v467_v13 = vmov 1983009808  }
   0xd   :  { %v305_v14 = vunpack.c.l.s4 %v467_v13 }
   0xf   :  { %221 = vmatpush1.bf16.msra.mxu0 %v424_v7 }
  0x10   :  { %222 = vmatprep.subr.bf16.mxu0 %v425_v8 }
  0x13   :  { %223 = vmatpush1.bf16.msra.mxu0 %v427_v9 }
  0x14   :  { %224 = vmatprep.subr.bf16.mxu0 %v428_v10 }
  0x17   :  { %225 = vmatpush1.bf16.msra.mxu0 %v430_v11 }
  0x18   :  { %226 = vmatprep.subr.bf16.mxu0 %v431_v12 }
  0x1b   :  { %227 = vmatpush1.bf16.msra.mxu0 %v433_v15  ;;  %v307_v15 = vlaneseq }
  0x1c   :  { %228 = vmatprep.subr.bf16.mxu0 %v434_v16  ;;  %v306_v16 = vunpack.c.0.s8 %v305_v14 }
  0x1f   :  { %229 = vmatpush1.bf16.msra.mxu0 %v436_v17  ;;  %v308_v17 = vshrl.u32 %v307_v15, 7 }
  0x20   :  { %230 = vmatprep.subr.bf16.mxu0 %v437_v18 }
  0x23   :  { %231 = vmatpush1.bf16.msra.mxu0 %v439_v19  ;;  %v309_v19 = vsub.s32 %v306_v16, %v308_v17 }
  0x24   :  { %232 = vmatprep.subr.bf16.mxu0 %v440_v20 }
  0x27   :  { %233 = vmatpush1.bf16.msra.mxu0 %v442_v21 }
  0x28   :  { %234 = vmatprep.subr.bf16.mxu0 %v443_v22  ;;  %v260_v22 = vld [vmem:[%s612_s2] sm:$0xf] }
  0x2b   :  { %235 = vmatpush1.bf16.msra.mxu0 %v445_v23 }
  0x2c   :  { %236 = vmatprep.subr.bf16.mxu0 %v446_v24  ;;  %v316_v24 = vsub.s32 0, %v308_v17 }
  0x2f   :  { %237 = vmatpush1.bf16.msra.mxu0 %v448_v25  ;;  %v320_v25 = vsub.s32 2, %v308_v17 }
  0x30   :  { %238 = vmatprep.subr.bf16.mxu0 %v449_v26 }
  0x33   :  { %239 = vmatpush1.bf16.msra.mxu0 %v451_v27 }
  0x34   :  { %240 = vmatprep.subr.bf16.mxu0 %v452_v28 }
  0x37   :  { %241 = vmatpush1.bf16.msra.mxu0 %v454_v29 }
  0x38   :  { %242 = vmatprep.subr.bf16.mxu0 %v455_v30 }
  0x3b   :  { %243 = vmatpush1.bf16.msra.mxu0 %v457_v31 }
  0x3c   :  { %244 = vmatprep.subr.bf16.mxu0 %v458_v32 }
  0x3f   :  { %245 = vmatpush1.bf16.msra.mxu0 %v460_v33 }
  0x42   :  { %247 = vmatmul.mubr.bf16.vlgmr.msra.gmra.mrb[0].mxu0 %v378_v34 }
 0x115   :  { %v587_v35 = vpop.f32.mrb[0].mxu0 }
 0x116   :  { %v261_v36 = vrot.slane %v587_v35, 4  ;;  %v275_v37 = vmul.f32 %v587_v35, %v587_v35  ;;  %v592_v38 = vpop.f32.mrb[1].mxu0 }
 0x117   :  { %v267_v39 = vrot.slane %v592_v38, 4  ;;  %v276_v40 = vmul.f32 %v592_v38, %v592_v38  ;;  %v252_v41 = vpop.f32.mrb[2].mxu0 }
 0x118   :  { %v262_v42 = vadd.f32 %v261_v36, %v587_v35  ;;  %v277_v43 = vrot.slane %v275_v37, 4  ;;  %v253_v44 = vpop.f32.mrb[3].mxu0  ;;  %v356_v41 = vsub.s32 3, %v308_v17 }
 0x119   :  { %v268_v45 = vadd.f32 %v267_v39, %v592_v38  ;;  %v283_v46 = vrot.slane %v276_v40, 4 }
 0x11a   :  { %v263_v47 = vrot.slane %v262_v42, 2  ;;  %v278_v48 = vadd.f32 %v277_v43, %v275_v37 }
 0x11b   :  { %v269_v49 = vrot.slane %v268_v45, 2  ;;  %v284_v50 = vadd.f32 %v283_v46, %v276_v40  ;;  %v352_v40 = vsub.s32 1, %v308_v17 }
 0x11c   :  { %v264_v51 = vadd.f32 %v263_v47, %v262_v42  ;;  %v279_v52 = vrot.slane %v278_v48, 2 }
 0x11d   :  { %v270_v53 = vadd.f32 %v269_v49, %v268_v45  ;;  %v285_v54 = vrot.slane %v284_v50, 2 }
 0x11e   :  { %v265_v55 = vrot.slane %v264_v51, 1  ;;  %v280_v56 = vadd.f32 %v279_v52, %v278_v48 }
 0x11f   :  { %v271_v57 = vrot.slane %v270_v53, 1  ;;  %v286_v58 = vadd.f32 %v285_v54, %v284_v50 }
 0x120   :  { %v266_v59 = vadd.f32 %v265_v55, %v264_v51  ;;  %v281_v60 = vrot.slane %v280_v56, 1 }
 0x121   :  { %v272_v61 = vadd.f32 %v271_v57, %v270_v53  ;;  %v287_v62 = vrot.slane %v286_v58, 1 }
 0x122   :  { %v273_v63 = vmul.f32 0.125, %v266_v59  ;;  %v282_v0 = vadd.f32 %v281_v60, %v280_v56 }
 0x123   :  { %v274_v1 = vmul.f32 0.125, %v272_v61  ;;  %v288_v2 = vadd.f32 %v287_v62, %v286_v58 }
 0x124   :  { %v289_v3 = vmul.f32 0.125, %v282_v0  ;;  %v291_v4 = vmul.f32 %v273_v63, %v273_v63 }
 0x125   :  { %v290_v5 = vmul.f32 0.125, %v288_v2  ;;  %v292_v6 = vmul.f32 %v274_v1, %v274_v1 }
 0x126   :  { %v293_v7 = vsub.f32 %v289_v3, %v291_v4 }
 0x127   :  { %v294_v8 = vsub.f32 %v290_v5, %v292_v6 }
 0x128   :  { %v295_v9 = vmax.f32 %v293_v7, 0.0 }
 0x129   :  { %v296_v10 = vmax.f32 %v294_v8, 0.0 }
 0x12a   :  { %v297_v11 = vadd.f32 1e-05, %v295_v9 }
 0x12b   :  { %v298_v12 = vadd.f32 1e-05, %v296_v10 }
 0x12c   :  { %463 = vrsqrt.f32 %v297_v11 }
 0x12d   :  { %465 = vrsqrt.f32 %v298_v12 }
 0x136   :  { %v464_v18 = vpop.eup %463 }
 0x137   :  { %v466_v20 = vpop.eup %465 }
 0x138   :  { %v303_v21 = vcombine.low %v464_v18, %v466_v20 }
 0x13a   :  { %v310_v23 = vrot.slane %v303_v21, %v309_v19 }
 0x13c   :  { %v312_v26 = vmul.f32 %v310_v23, %v260_v22 }
 0x13e   :  { %v317_v27 = vrot.slane %v312_v26, %v316_v24  ;;  %v321_v28 = vrot.slane %v312_v26, %v320_v25 }
 0x140   :  { %v324_v29 = vmul.f32 %v317_v27, %v273_v63  ;;  %v325_v30 = vmul.f32 %v321_v28, %v274_v1  ;;  %v342_v31 = vrot.slane %v317_v27, %v316_v24  ;;  %v346_v32 = vrot.slane %v321_v28, %v316_v24 }
 0x142   :  { %v328_v33 = vcombine.low %v324_v29, %v325_v30  ;;  %v347_v34 = vmul.f32 %v342_v31, %v587_v35  ;;  %v348_v36 = vmul.f32 %v346_v32, %v592_v38 }
 0x144   :  { %v335_v37 = vrot.slane %v328_v33, %v309_v19 }
 0x146   :  { %v336_v39 = vrot.slane %v335_v37, 7 }
 0x148   :  { %v338_v42 = vsub.f32 %v260_v22, %v336_v39 }
 0x14a   :  { %v353_v43 = vrot.slane %v338_v42, %v352_v40  ;;  %v357_v44 = vrot.slane %v338_v42, %v356_v41 }
 0x14c   :  { %v363_v45 = vrot.slane %v353_v43, %v352_v40  ;;  %v367_v46 = vrot.slane %v357_v44, %v352_v40 }
 0x14e   :  { %v368_v47 = vadd.f32 %v363_v45, %v347_v34  ;;  %v369_v48 = vadd.f32 %v367_v46, %v348_v36 }
 0x150   :  { %370 = vst [vmem:[%s613_s3] sm:$0xff] %v368_v47  ;;  %371 = vst [vmem:[%s613_s3 + $0x8] sm:$0xff] %v369_v48 }

</bundles_post_ra>
